<compile_context>
chip_gen: v7x
topology: tpu7x:2x2x1
jax: 0.10.0
libtpu: 0.0.40
codegen_flags: <defaults>
</compile_context>

<pallas_src>
import functools

import jax
import jax.numpy as jnp
from jax import lax
from jax.experimental import pallas as pl
from jax.experimental.pallas import tpu as pltpu

# Plain Python floats (NOT jnp arrays) so the kernel does not capture traced
# constants — that was the previous compile failure.
_EPS = 1e-12            # inside the sqrt of the inverse-distance weight
_DET_EPS = 1e-30        # determinant clamp (degenerate / padded columns)

_LANE_CHUNK = 256       # lanes processed per inner-loop step (bounds vreg live ranges)
_MAX_TILE_N = 8192      # max nodes per grid block (lane axis)
_INPUT_VMEM_BUDGET = 12 * 1024 * 1024   # double-buffered inputs (v5e-scoped-VMEM safe)


# ----------------------------------------------------------------------------
# Pallas kernel: weighted LS normal equations + Cramer solve, multi-RHS
# ----------------------------------------------------------------------------
def _ls_kernel(*refs, dim, n_rhs, lane_chunk):
    """refs = dim delta refs + n_rhs du refs, each (K, T); then out_ref (n_rhs*dim, T).

    Nodes live on the 128-lane axis; the K incident edges live on sublanes, so
    all weighted moment sums are cheap sublane reductions.  The lane axis is
    walked in `lane_chunk` slices so the (K, chunk) temporaries stay resident
    in vregs (no VMEM spill traffic) even for large DMA tiles.
    """
    out_ref = refs[-1]
    in_refs = refs[:-1]
    tile = out_ref.shape[1]
    n_chunks = tile // lane_chunk

    @pl.loop(0, n_chunks)
    def _(c):
        off = pl.multiple_of(c * lane_chunk, lane_chunk)
        sl = pl.ds(off, lane_chunk)

        if dim == 2:
            dx = in_refs[0][:, sl]
            dy = in_refs[1][:, sl]
            w = lax.rsqrt(dx * dx + dy * dy + _EPS)            # EUP
            wdx = w * dx
            wdy = w * dy
            a11 = jnp.sum(wdx * dx, axis=0, keepdims=True)
            a12 = jnp.sum(wdx * dy, axis=0, keepdims=True)
            a22 = jnp.sum(wdy * dy, axis=0, keepdims=True)
            det = a11 * a22 - a12 * a12
            det = jnp.where(jnp.abs(det) < _DET_EPS, 1.0, det)
            r = pl.reciprocal(det, approx=True)                 # EUP
            inv_det = r * (2.0 - det * r)                       # one Newton step
            rows = []
            for k in range(n_rhs):
                du = in_refs[dim + k][:, sl]
                b1 = jnp.sum(wdx * du, axis=0, keepdims=True)
                b2 = jnp.sum(wdy * du, axis=0, keepdims=True)
                rows.append((a22 * b1 - a12 * b2) * inv_det)
                rows.append((a11 * b2 - a12 * b1) * inv_det)
        else:
            dx = in_refs[0][:, sl]
            dy = in_refs[1][:, sl]
            dz = in_refs[2][:, sl]
            w = lax.rsqrt(dx * dx + dy * dy + dz * dz + _EPS)
            wdx = w * dx
            wdy = w * dy
            wdz = w * dz
            a11 = jnp.sum(wdx * dx, axis=0, keepdims=True)
            a12 = jnp.sum(wdx * dy, axis=0, keepdims=True)
            a13 = jnp.sum(wdx * dz, axis=0, keepdims=True)
            a22 = jnp.sum(wdy * dy, axis=0, keepdims=True)
            a23 = jnp.sum(wdy * dz, axis=0, keepdims=True)
            a33 = jnp.sum(wdz * dz, axis=0, keepdims=True)
            # adjugate of the symmetric 3x3 normal matrix
            i11 = a22 * a33 - a23 * a23
            i12 = a13 * a23 - a12 * a33
            i13 = a12 * a23 - a13 * a22
            i22 = a11 * a33 - a13 * a13
            i23 = a12 * a13 - a11 * a23
            i33 = a11 * a22 - a12 * a12
            det = a11 * i11 + a12 * i12 + a13 * i13
            det = jnp.where(jnp.abs(det) < _DET_EPS, 1.0, det)
            r = pl.reciprocal(det, approx=True)
            inv_det = r * (2.0 - det * r)
            rows = []
            for k in range(n_rhs):
                du = in_refs[dim + k][:, sl]
                b1 = jnp.sum(wdx * du, axis=0, keepdims=True)
                b2 = jnp.sum(wdy * du, axis=0, keepdims=True)
                b3 = jnp.sum(wdz * du, axis=0, keepdims=True)
                rows.append((i11 * b1 + i12 * b2 + i13 * b3) * inv_det)
                rows.append((i12 * b1 + i22 * b2 + i23 * b3) * inv_det)
                rows.append((i13 * b1 + i23 * b2 + i33 * b3) * inv_det)

        # one dense (n_rhs*dim, lane_chunk) store instead of per-row masked stores
        out_ref[:, sl] = jnp.concatenate(rows, axis=0)


# ----------------------------------------------------------------------------
# Tiling heuristic: lane-axis node tiles
# ----------------------------------------------------------------------------
def _round_up(x, m):
    return -(-x // m) * m


def _pick_tiling(n_nodes, k_neighbors, n_channels):
    """Nodes-per-block: multiple of the in-kernel lane chunk, capped by
    _MAX_TILE_N and a conservative double-buffer VMEM budget, and at most
    ~ceil(N/2) so >=2 grid blocks exist when N allows (keeps the 'parallel'
    node axis shardable across both v7x TensorCores)."""
    bytes_per_node = n_channels * 2 * k_neighbors * 4          # 2 pipeline buffers
    by_vmem = (_INPUT_VMEM_BUDGET // max(1, bytes_per_node)) // _LANE_CHUNK * _LANE_CHUNK
    by_vmem = max(_LANE_CHUNK, by_vmem)
    half = _round_up(max(1, -(-n_nodes // 2)), _LANE_CHUNK)
    tile = max(_LANE_CHUNK, min(_MAX_TILE_N, by_vmem, half))
    n_blocks = -(-n_nodes // tile)
    return tile, n_blocks, n_blocks * tile


# ----------------------------------------------------------------------------
# Pallas wrapper: node-on-lanes layout, per-channel inputs (no re-layout pass)
# ----------------------------------------------------------------------------
def _ls_solve(deltas, dus, dim, tile, n_blocks, n_nodes):
    """deltas: dim arrays (K, Np); dus: n_rhs arrays (K, Np).
    Returns (n_rhs, dim, N) float32 least-squares gradients."""
    n_rhs = len(dus)
    K, Np = deltas[0].shape
    lane_chunk = min(_LANE_CHUNK, tile)

    kernel = functools.partial(_ls_kernel, dim=dim, n_rhs=n_rhs, lane_chunk=lane_chunk)
    chan_spec = pl.BlockSpec((K, tile), lambda i: (0, i))

    out = pl.pallas_call(
        kernel,
        out_shape=jax.ShapeDtypeStruct((n_rhs * dim, Np), jnp.float32),
        grid_spec=pltpu.PrefetchScalarGridSpec(
            num_scalar_prefetch=0,
            grid=(n_blocks,),
            in_specs=[chan_spec] * (dim + n_rhs),
            out_specs=pl.BlockSpec((n_rhs * dim, tile), lambda i: (0, i)),
        ),
        compiler_params=pltpu.CompilerParams(
            dimension_semantics=("parallel",),      # megacore-shardable node axis
        ),
    )(*[a.astype(jnp.float32) for a in deltas],
      *[a.astype(jnp.float32) for a in dus])
    return out[:, :n_nodes].reshape(n_rhs, dim, n_nodes)


# ----------------------------------------------------------------------------
# Module (mirrors the PyTorch forward; order-2 path fused into one solve)
# ----------------------------------------------------------------------------
class GradientsLeastSquares:
    def __init__(self, invar, dim=3, order=1, return_mixed_derivs=False):
        self.invar = invar
        self.dim = dim
        self.order = order
        self.return_mixed_derivs = return_mixed_derivs
        assert self.dim > 1, "1D gradients using Least squares is not supported."
        assert self.order < 3, "Derivatives only upto 2nd order are supported"
        if self.return_mixed_derivs:
            assert self.order == 2, "Mixed derivs not possible for first order"

    def __call__(self, input_dict):
        coords = input_dict["coordinates"]
        assert coords.shape[1] == self.dim, (
            f"Expected shape (N, {self.dim}), but got {coords.shape}"
        )
        conn = input_dict["connectivity_tensor"]
        u = input_dict[self.invar]
        dim = self.dim
        names = "xyz"[:dim]
        N = coords.shape[0]
        K = conn.shape[1]

        n_rhs_max = 1 if self.order == 1 else dim
        tile, n_blocks, Np = _pick_tiling(N, K, dim + n_rhs_max)

        # neighbour-major (K, Np) endpoint indices, transposed + padded ONCE
        # (cheap int32) so every gather below lands directly in kernel layout.
        i0 = conn[:, :, 0].T.astype(jnp.int32)
        i1 = conn[:, :, 1].T.astype(jnp.int32)
        if Np != N:
            i0 = jnp.pad(i0, ((0, 0), (0, Np - N)))     # padded columns -> node 0
            i1 = jnp.pad(i1, ((0, 0), (0, Np - N)))     # (d = 0, du = 0, output 0)

        def edge_diff(col):
            col = col.reshape(-1).astype(jnp.float32)
            return col[i1] - col[i0]                     # (K, Np), neighbour-major

        # edge geometry: computed once, shared by first- and second-order solves
        deltas = [edge_diff(coords[:, a]) for a in range(dim)]

        # TODO(synk): exact internal weighting of physicsnemo's ls_grads.FirstDeriv
        # is not available; standard inverse-distance weighted LS (w = 1/||d||) is used.
        first = _ls_solve(deltas, [edge_diff(u)], dim, tile, n_blocks, N)[0]  # (dim, N)

        result = {}
        if self.order == 1:
            for a in range(dim):
                result[f"{self.invar}__{names[a]}"] = first[a][:, None]
            return result

        # order == 2: one fused multi-RHS solve — geometry DMA'd / factored once
        dus2 = [edge_diff(first[a]) for a in range(dim)]
        second = _ls_solve(deltas, dus2, dim, tile, n_blocks, N)   # (dim, dim, N)
        for a in range(dim):
            result[f"{self.invar}__{names[a]}__{names[a]}"] = second[a, a][:, None]
        if self.return_mixed_derivs:
            # matches the PyTorch reference symmetrization: both orders use
            # d(first_a)/d(b) with a < b (e.g. u__y__x := dderivs_x[1]).
            result[f"{self.invar}__x__y"] = second[0, 1][:, None]
            result[f"{self.invar}__y__x"] = second[0, 1][:, None]
            if dim == 3:
                result[f"{self.invar}__x__z"] = second[0, 2][:, None]
                result[f"{self.invar}__z__x"] = second[0, 2][:, None]
                result[f"{self.invar}__y__z"] = second[1, 2][:, None]
                result[f"{self.invar}__z__y"] = second[1, 2][:, None]
        return result


# ----------------------------------------------------------------------------
# Demo
# ----------------------------------------------------------------------------
if __name__ == "__main__":
    key = jax.random.PRNGKey(0)
    N, K, dim = 64, 16, 3

    k_coords, k_conn = jax.random.split(key)
    coords = jax.random.normal(k_coords, (N, dim), dtype=jnp.float32)

    # connectivity_tensor (N, K, 2): edge (node, neighbour) per incident edge
    self_idx = jnp.tile(jnp.arange(N, dtype=jnp.int32)[:, None], (1, K))
    nbr_idx = jax.random.randint(k_conn, (N, K), 0, N, dtype=jnp.int32)
    nbr_idx = jnp.where(nbr_idx == self_idx, (nbr_idx + 1) % N, nbr_idx)
    connectivity = jnp.stack([self_idx, nbr_idx], axis=-1)

    # smooth field u(x, y, z), shape (N, 1)
    u = coords[:, 0:1] ** 2 + 0.5 * coords[:, 1:2] - 0.25 * coords[:, 2:3]

    input_dict = {
        "coordinates": coords,
        "connectivity_tensor": connectivity,
        "u": u,
    }

    module1 = GradientsLeastSquares("u", dim=3, order=1)
    out1 = module1(input_dict)

    module2 = GradientsLeastSquares("u", dim=3, order=2, return_mixed_derivs=True)
    out2 = module2(input_dict)

    jax.block_until_ready(out1)
    jax.block_until_ready(out2)

    expected1 = {"u__x", "u__y", "u__z"}
    expected2 = {
        "u__x__x", "u__y__y", "u__z__z",
        "u__x__y", "u__y__x", "u__x__z", "u__z__x", "u__y__z", "u__z__y",
    }
    assert set(out1) == expected1 and set(out2) == expected2
    for v in list(out1.values()) + list(out2.values()):
        assert v.shape == (N, 1)
        assert bool(jnp.all(jnp.isfinite(v)))

    print("KERNEL_OK")
</pallas_src>

<mosaic_0001>
module attributes {stable_mosaic.version = 11 : i64} {
  func.func @_ls_kernel(%arg0: i32, %arg1: memref<16x256xf32, #tpu.memory_space<vmem>>, %arg2: memref<16x256xf32, #tpu.memory_space<vmem>>, %arg3: memref<16x256xf32, #tpu.memory_space<vmem>>, %arg4: memref<16x256xf32, #tpu.memory_space<vmem>>, %arg5: memref<3x256xf32, #tpu.memory_space<vmem>>) attributes {dimension_semantics = [#tpu.dimension_semantics<parallel>], iteration_bounds = array<i64: 1>, scalar_prefetch = 0 : i64, scratch_operands = 0 : i64, tpu.core_type = #tpu.core_type<tc>, window_params = [{transform_indices = @transform_0, window_bounds = array<i64: 16, 256>}, {transform_indices = @transform_1, window_bounds = array<i64: 16, 256>}, {transform_indices = @transform_2, window_bounds = array<i64: 16, 256>}, {transform_indices = @transform_3, window_bounds = array<i64: 16, 256>}, {transform_indices = @transform_4, window_bounds = array<i64: 3, 256>}]} {
    %c0_i32 = arith.constant 0 : i32
    %c1_i32 = arith.constant 1 : i32
    %0 = arith.muli %c0_i32, %c1_i32 : i32
    %c0_i32_0 = arith.constant 0 : i32
    %1 = arith.addi %c0_i32_0, %0 : i32
    %c256_i32 = arith.constant 256 : i32
    %2 = arith.muli %1, %c256_i32 : i32
    %3 = tpu.assume_multiple %2, 256 : i32
    %c0 = arith.constant 0 : index
    %4 = arith.index_cast %3 : i32 to index
    %5 = vector.load %arg1[%c0, %4] : memref<16x256xf32, #tpu.memory_space<vmem>>, vector<16x256xf32>
    %c0_1 = arith.constant 0 : index
    %6 = arith.index_cast %3 : i32 to index
    %7 = vector.load %arg2[%c0_1, %6] : memref<16x256xf32, #tpu.memory_space<vmem>>, vector<16x256xf32>
    %c0_2 = arith.constant 0 : index
    %8 = arith.index_cast %3 : i32 to index
    %9 = vector.load %arg3[%c0_2, %8] : memref<16x256xf32, #tpu.memory_space<vmem>>, vector<16x256xf32>
    %10 = arith.mulf %5, %5 : vector<16x256xf32>
    %11 = arith.mulf %7, %7 : vector<16x256xf32>
    %12 = arith.addf %10, %11 : vector<16x256xf32>
    %13 = arith.mulf %9, %9 : vector<16x256xf32>
    %14 = arith.addf %12, %13 : vector<16x256xf32>
    %cst = arith.constant 9.99999996E-13 : f32
    %15 = vector.broadcast %cst : f32 to vector<16x256xf32>
    %16 = arith.addf %14, %15 : vector<16x256xf32>
    %17 = math.rsqrt %16 : vector<16x256xf32>
    %18 = arith.mulf %17, %5 : vector<16x256xf32>
    %19 = arith.mulf %17, %7 : vector<16x256xf32>
    %20 = arith.mulf %17, %9 : vector<16x256xf32>
    %21 = arith.mulf %18, %5 : vector<16x256xf32>
    %cst_3 = arith.constant dense<0.000000e+00> : vector<256xf32>
    %22 = vector.multi_reduction <add>, %21, %cst_3 [0] : vector<16x256xf32> to vector<256xf32>
    %23 = vector.shape_cast %22 : vector<256xf32> to vector<1x256xf32>
    %24 = arith.mulf %18, %7 : vector<16x256xf32>
    %cst_4 = arith.constant dense<0.000000e+00> : vector<256xf32>
    %25 = vector.multi_reduction <add>, %24, %cst_4 [0] : vector<16x256xf32> to vector<256xf32>
    %26 = vector.shape_cast %25 : vector<256xf32> to vector<1x256xf32>
    %27 = arith.mulf %18, %9 : vector<16x256xf32>
    %cst_5 = arith.constant dense<0.000000e+00> : vector<256xf32>
    %28 = vector.multi_reduction <add>, %27, %cst_5 [0] : vector<16x256xf32> to vector<256xf32>
    %29 = vector.shape_cast %28 : vector<256xf32> to vector<1x256xf32>
    %30 = arith.mulf %19, %7 : vector<16x256xf32>
    %cst_6 = arith.constant dense<0.000000e+00> : vector<256xf32>
    %31 = vector.multi_reduction <add>, %30, %cst_6 [0] : vector<16x256xf32> to vector<256xf32>
    %32 = vector.shape_cast %31 : vector<256xf32> to vector<1x256xf32>
    %33 = arith.mulf %19, %9 : vector<16x256xf32>
    %cst_7 = arith.constant dense<0.000000e+00> : vector<256xf32>
    %34 = vector.multi_reduction <add>, %33, %cst_7 [0] : vector<16x256xf32> to vector<256xf32>
    %35 = vector.shape_cast %34 : vector<256xf32> to vector<1x256xf32>
    %36 = arith.mulf %20, %9 : vector<16x256xf32>
    %cst_8 = arith.constant dense<0.000000e+00> : vector<256xf32>
    %37 = vector.multi_reduction <add>, %36, %cst_8 [0] : vector<16x256xf32> to vector<256xf32>
    %38 = vector.shape_cast %37 : vector<256xf32> to vector<1x256xf32>
    %39 = arith.mulf %32, %38 : vector<1x256xf32>
    %40 = arith.mulf %35, %35 : vector<1x256xf32>
    %41 = arith.subf %39, %40 : vector<1x256xf32>
    %42 = arith.mulf %29, %35 : vector<1x256xf32>
    %43 = arith.mulf %26, %38 : vector<1x256xf32>
    %44 = arith.subf %42, %43 : vector<1x256xf32>
    %45 = arith.mulf %26, %35 : vector<1x256xf32>
    %46 = arith.mulf %29, %32 : vector<1x256xf32>
    %47 = arith.subf %45, %46 : vector<1x256xf32>
    %48 = arith.mulf %23, %38 : vector<1x256xf32>
    %49 = arith.mulf %29, %29 : vector<1x256xf32>
    %50 = arith.subf %48, %49 : vector<1x256xf32>
    %51 = arith.mulf %26, %29 : vector<1x256xf32>
    %52 = arith.mulf %23, %35 : vector<1x256xf32>
    %53 = arith.subf %51, %52 : vector<1x256xf32>
    %54 = arith.mulf %23, %32 : vector<1x256xf32>
    %55 = arith.mulf %26, %26 : vector<1x256xf32>
    %56 = arith.subf %54, %55 : vector<1x256xf32>
    %57 = arith.mulf %23, %41 : vector<1x256xf32>
    %58 = arith.mulf %26, %44 : vector<1x256xf32>
    %59 = arith.addf %57, %58 : vector<1x256xf32>
    %60 = arith.mulf %29, %47 : vector<1x256xf32>
    %61 = arith.addf %59, %60 : vector<1x256xf32>
    %62 = math.absf %61 : vector<1x256xf32>
    %cst_9 = arith.constant 1.000000e-30 : f32
    %63 = vector.broadcast %cst_9 : f32 to vector<1x256xf32>
    %64 = arith.cmpf olt, %62, %63 : vector<1x256xf32>
    %cst_10 = arith.constant 1.000000e+00 : f32
    %65 = vector.broadcast %cst_10 : f32 to vector<1x256xf32>
    %66 = arith.select %64, %65, %61 : vector<1x256xi1>, vector<1x256xf32>
    %67 = tpu.reciprocal %66 {approx = true} : vector<1x256xf32> -> vector<1x256xf32>
    %68 = arith.mulf %66, %67 : vector<1x256xf32>
    %cst_11 = arith.constant 2.000000e+00 : f32
    %69 = vector.broadcast %cst_11 : f32 to vector<1x256xf32>
    %70 = arith.subf %69, %68 : vector<1x256xf32>
    %71 = arith.mulf %67, %70 : vector<1x256xf32>
    %c0_12 = arith.constant 0 : index
    %72 = arith.index_cast %3 : i32 to index
    %73 = vector.load %arg4[%c0_12, %72] : memref<16x256xf32, #tpu.memory_space<vmem>>, vector<16x256xf32>
    %74 = arith.mulf %18, %73 : vector<16x256xf32>
    %cst_13 = arith.constant dense<0.000000e+00> : vector<256xf32>
    %75 = vector.multi_reduction <add>, %74, %cst_13 [0] : vector<16x256xf32> to vector<256xf32>
    %76 = vector.shape_cast %75 : vector<256xf32> to vector<1x256xf32>
    %77 = arith.mulf %19, %73 : vector<16x256xf32>
    %cst_14 = arith.constant dense<0.000000e+00> : vector<256xf32>
    %78 = vector.multi_reduction <add>, %77, %cst_14 [0] : vector<16x256xf32> to vector<256xf32>
    %79 = vector.shape_cast %78 : vector<256xf32> to vector<1x256xf32>
    %80 = arith.mulf %20, %73 : vector<16x256xf32>
    %cst_15 = arith.constant dense<0.000000e+00> : vector<256xf32>
    %81 = vector.multi_reduction <add>, %80, %cst_15 [0] : vector<16x256xf32> to vector<256xf32>
    %82 = vector.shape_cast %81 : vector<256xf32> to vector<1x256xf32>
    %83 = arith.mulf %41, %76 : vector<1x256xf32>
    %84 = arith.mulf %44, %79 : vector<1x256xf32>
    %85 = arith.addf %83, %84 : vector<1x256xf32>
    %86 = arith.mulf %47, %82 : vector<1x256xf32>
    %87 = arith.addf %85, %86 : vector<1x256xf32>
    %88 = arith.mulf %87, %71 : vector<1x256xf32>
    %89 = arith.mulf %44, %76 : vector<1x256xf32>
    %90 = arith.mulf %50, %79 : vector<1x256xf32>
    %91 = arith.addf %89, %90 : vector<1x256xf32>
    %92 = arith.mulf %53, %82 : vector<1x256xf32>
    %93 = arith.addf %91, %92 : vector<1x256xf32>
    %94 = arith.mulf %93, %71 : vector<1x256xf32>
    %95 = arith.mulf %47, %76 : vector<1x256xf32>
    %96 = arith.mulf %53, %79 : vector<1x256xf32>
    %97 = arith.addf %95, %96 : vector<1x256xf32>
    %98 = arith.mulf %56, %82 : vector<1x256xf32>
    %99 = arith.addf %97, %98 : vector<1x256xf32>
    %100 = arith.mulf %99, %71 : vector<1x256xf32>
    %101 = tpu.concatenate %88, %94, %100 in 0 : vector<1x256xf32>, vector<1x256xf32>, vector<1x256xf32> -> vector<3x256xf32>
    %c0_16 = arith.constant 0 : index
    %102 = arith.index_cast %3 : i32 to index
    %103 = vector.load %arg5[%c0_16, %102] : memref<3x256xf32, #tpu.memory_space<vmem>>, vector<3x256xf32>
    tpu.vector_store %arg5[%c0_16, %102], %101 {strides = array<i32>} : memref<3x256xf32, #tpu.memory_space<vmem>>, vector<3x256xf32>,
    %c1_i32_17 = arith.constant 1 : i32
    return
  }
  func.func @transform_0(%arg0: i32) -> (i32, i32) {
    %c0_i32 = arith.constant 0 : i32
    %c0_i32_0 = arith.constant 0 : i32
    return %c0_i32, %arg0 : i32, i32
  }
  func.func @transform_1(%arg0: i32) -> (i32, i32) {
    %c0_i32 = arith.constant 0 : i32
    %c0_i32_0 = arith.constant 0 : i32
    return %c0_i32, %arg0 : i32, i32
  }
  func.func @transform_2(%arg0: i32) -> (i32, i32) {
    %c0_i32 = arith.constant 0 : i32
    %c0_i32_0 = arith.constant 0 : i32
    return %c0_i32, %arg0 : i32, i32
  }
  func.func @transform_3(%arg0: i32) -> (i32, i32) {
    %c0_i32 = arith.constant 0 : i32
    %c0_i32_0 = arith.constant 0 : i32
    return %c0_i32, %arg0 : i32, i32
  }
  func.func @transform_4(%arg0: i32) -> (i32, i32) {
    %c0_i32 = arith.constant 0 : i32
    %c0_i32_0 = arith.constant 0 : i32
    return %c0_i32, %arg0 : i32, i32
  }
}

</mosaic_0001>

<bundles_post_ra>
// kernel: tpu_custom_call.1
= control target key start
LH: loop header
LB: loop body
LE: loop exit
PB: predicated region body
PF: predicated region fallthrough
CT: control target
= control target key end

     0   :  { %9 = vsyncpa [#allocation3], 0  ;;  %s926_s0 = inlined_call_operand.hbm [shape: f32[16,256], index: 0, kind: input, shape index: {}]   ;;  %s927_s1 = inlined_call_operand.hbm [shape: f32[16,256], index: 1, kind: input, shape index: {}]   ;;  %s928_s2 = inlined_call_operand.hbm [shape: f32[16,256], index: 2, kind: input, shape index: {}]   ;;  %s929_s3 = inlined_call_operand.hbm [shape: f32[16,256], index: 3, kind: input, shape index: {}]   ;;  %s930_s4 = inlined_call_operand.hbm [shape: f32[3,256], index: 4, kind: output, shape index: {}]  }
   0x1   :  { %10 = vsyncpa [#allocation6], 0 }
   0x2   :  { %11 = vsyncpa [#allocation9], 0 }
   0x3   :  { %12 = vsyncpa [#allocation4], 0  ;;  %s552_s15 = smov [#allocation5]   ;;  %s553_s17 = smov [#allocation2]  }
   0x4   :  { %s30_s16 = sshll.u32 %s552_s15, 4  ;;  %s18_s18 = sshll.u32 %s553_s17, 4  ;;  %s31_s16 = int_to_ptr.vmem [resolvable:$true] %s30_s16  ;;  %s584_s18 = int_to_ptr.vmem [resolvable:$true] %s18_s18 }
   0x5   :  { %s434_s21 = scalar_lea.hbm %s927_s1, 512 }
   0x6   :  { %p435_p0 = scmp.ne.s32.totalorder %s927_s1, %s434_s21  ;;  %p438_p1 = scmp.lt.u32.totalorder %s434_s21, %s927_s1 }
   0x8   :  { %p440_p2 = pnand %p438_p1, %p435_p0 }
   0xa   :  { %443 = shalt.err (!%p440_p2)
}
   0xb   :  { %s444_s26 = scalar_lea.vmem %s31_s16, 512  ;;  %p449_p4 = scmp.lt.s32.totalorder %s31_s16, %s31_s16 }
   0xc   :  { %p445_p3 = scmp.ne.s32.totalorder %s31_s16, %s444_s26  ;;  %p450_p5 = scmp.lt.s32.totalorder %s444_s26, %s444_s26 }
   0xe   :  { %p451_p6 = por %p450_p5, %p449_p4 }
  0x10   :  { %p452_p7 = pnand %p451_p6, %p445_p3 }
  0x12   :  { %455 = shalt.err (!%p452_p7)
}
  0x13   :  { %s554_s27 = smov 256   ;;  %s555_s28 = smov 16  }
  0x14   :  { %36 = dma.hbm_to_vmem [thread:$0]  %s927_s1, 512, %s31_s16, [#allocation6], %s554_s27, %s554_s27, %s555_s28  }
  0x15   :  { %s456_s7 = scalar_lea.hbm %s926_s0, 512 }
  0x16   :  { %p457_p8 = scmp.ne.s32.totalorder %s926_s0, %s456_s7  ;;  %p460_p9 = scmp.lt.u32.totalorder %s456_s7, %s926_s0 }
  0x18   :  { %p462_p10 = pnand %p460_p9, %p457_p8 }
  0x1a   :  { %465 = shalt.err (!%p462_p10)
}
  0x1b   :  { %s466_s12 = scalar_lea.vmem %s584_s18, 512  ;;  %p471_p12 = scmp.lt.s32.totalorder %s584_s18, %s584_s18 }
  0x1c   :  { %p467_p11 = scmp.ne.s32.totalorder %s584_s18, %s466_s12  ;;  %p472_p13 = scmp.lt.s32.totalorder %s466_s12, %s466_s12 }
  0x1e   :  { %p473_p0 = por %p472_p13, %p471_p12 }
  0x20   :  { %p474_p1 = pnand %p473_p0, %p467_p11 }
  0x22   :  { %477 = shalt.err (!%p474_p1)
}
  0x23   :  { %24 = dma.hbm_to_vmem [thread:$0]  %s926_s0, 512, %s584_s18, [#allocation3], %s554_s27, %s554_s27, %s555_s28  }
  0x24   :  { %s556_s14 = smov [#allocation7]   ;;  %s557_s16 = smov [#allocation8]  }
  0x25   :  { %s42_s15 = sshll.u32 %s556_s14, 4  ;;  %s54_s17 = sshll.u32 %s557_s16, 4  ;;  %s43_s15 = int_to_ptr.vmem [resolvable:$true] %s42_s15  ;;  %s621_s17 = int_to_ptr.vmem [resolvable:$true] %s54_s17 }
  0x26   :  { %s478_s21 = scalar_lea.hbm %s928_s2, 512 }
  0x27   :  { %p479_p2 = scmp.ne.s32.totalorder %s928_s2, %s478_s21  ;;  %p482_p3 = scmp.lt.u32.totalorder %s478_s21, %s928_s2 }
  0x29   :  { %p484_p4 = pnand %p482_p3, %p479_p2 }
  0x2b   :  { %487 = shalt.err (!%p484_p4)
}
  0x2c   :  { %s488_s0 = scalar_lea.vmem %s43_s15, 512  ;;  %p493_p6 = scmp.lt.s32.totalorder %s43_s15, %s43_s15 }
  0x2d   :  { %p489_p5 = scmp.ne.s32.totalorder %s43_s15, %s488_s0  ;;  %p494_p7 = scmp.lt.s32.totalorder %s488_s0, %s488_s0 }
  0x2f   :  { %p495_p8 = por %p494_p7, %p493_p6 }
  0x31   :  { %p496_p9 = pnand %p495_p8, %p489_p5 }
  0x33   :  { %499 = shalt.err (!%p496_p9)
}
  0x34   :  { %48 = dma.hbm_to_vmem [thread:$0]  %s928_s2, 512, %s43_s15, [#allocation6], %s554_s27, %s554_s27, %s555_s28  }
  0x35   :  { %s500_s5 = scalar_lea.hbm %s929_s3, 512 }
  0x36   :  { %p501_p10 = scmp.ne.s32.totalorder %s929_s3, %s500_s5  ;;  %p504_p11 = scmp.lt.u32.totalorder %s500_s5, %s929_s3 }
  0x38   :  { %p506_p12 = pnand %p504_p11, %p501_p10 }
  0x3a   :  { %509 = shalt.err (!%p506_p12)
}
  0x3b   :  { %s510_s10 = scalar_lea.vmem %s621_s17, 512  ;;  %p515_p0 = scmp.lt.s32.totalorder %s621_s17, %s621_s17 }
  0x3c   :  { %p511_p13 = scmp.ne.s32.totalorder %s621_s17, %s510_s10  ;;  %p516_p1 = scmp.lt.s32.totalorder %s510_s10, %s510_s10 }
  0x3e   :  { %p517_p2 = por %p516_p1, %p515_p0 }
  0x40   :  { %p518_p3 = pnand %p517_p2, %p511_p13 }
  0x42   :  { %521 = shalt.err (!%p518_p3)
}
  0x43   :  { %60 = dma.hbm_to_vmem [thread:$0]  %s929_s3, 512, %s621_s17, [#allocation9], %s554_s27, %s554_s27, %s555_s28  }
  0x44   :  { %544 = dma.done.wait [#allocation3], 512  }
  0x45   :  { %545 = vsyncadd [#allocation3], 4294966784 }
  0x46   :  { %546 = dma.done.wait [#allocation6], 1024  }
  0x47   :  { %547 = vsyncadd [#allocation6], 4294966272 }
  0x48   :  { %548 = dma.done.wait [#allocation9], 512  }
  0x49   :  { %549 = vsyncadd [#allocation9], 4294966784  ;;  %v73_v0 = vld [vmem:[#allocation2] sm:$0xff]  ;;  %v74_v1 = vld [vmem:[#allocation2 + $0x8] sm:$0xff]  ;;  %vm387_vm2 = vcmask 1040384   ;;  %vm390_vm3 = vcmask 1041408  }
  0x4a   :  { %v75_v2 = vld [vmem:[#allocation2 + $0x10] sm:$0xff]  ;;  %v76_v3 = vld [vmem:[#allocation2 + $0x18] sm:$0xff]  ;;  %v658_v4 = vld [vmem:[#allocation5] sm:$0xff]  ;;  %v85_v6 = vmul.f32 %v73_v0, %v73_v0  ;;  %v86_v7 = vmul.f32 %v74_v1, %v74_v1  ;;  %s558_s3 = smov [#allocation10]  }
  0x4b   :  { %v660_v5 = vld [vmem:[#allocation5 + $0x8] sm:$0xff]  ;;  %v87_v8 = vmul.f32 %v75_v2, %v75_v2  ;;  %v662_v9 = vld [vmem:[#allocation5 + $0x10] sm:$0xff]  ;;  %v664_v10 = vld [vmem:[#allocation5 + $0x18] sm:$0xff]  ;;  %v88_v12 = vmul.f32 %v76_v3, %v76_v3  ;;  %v89_v13 = vmul.f32 %v658_v4, %v658_v4  ;;  %s404_s27 = sshll.u32 %s558_s3, 4  ;;  %s405_s27 = int_to_ptr.vmem [resolvable:$true] %s404_s27 }
  0x4c   :  { %v666_v11 = vld [vmem:[#allocation7] sm:$0xff]  ;;  %v90_v14 = vmul.f32 %v660_v5, %v660_v5  ;;  %v672_v15 = vld [vmem:[#allocation7 + $0x8] sm:$0xff]  ;;  %v674_v16 = vld [vmem:[#allocation7 + $0x10] sm:$0xff]  ;;  %v91_v18 = vmul.f32 %v662_v9, %v662_v9  ;;  %v92_v19 = vmul.f32 %v664_v10, %v664_v10  ;;  %s522_s28 = scalar_lea.vmem %s405_s27, 128  ;;  %p527_p5 = scmp.lt.s32.totalorder %s405_s27, %s405_s27 }
  0x4d   :  { %v676_v17 = vld [vmem:[#allocation7 + $0x18] sm:$0xff]  ;;  %v97_v20 = vmul.f32 %v666_v11, %v666_v11  ;;  %v93_v21 = vadd.f32 %v89_v13, %v85_v6  ;;  %v98_v23 = vmul.f32 %v672_v15, %v672_v15  ;;  %v99_v24 = vmul.f32 %v674_v16, %v674_v16  ;;  %p523_p4 = scmp.ne.s32.totalorder %s405_s27, %s522_s28  ;;  %p528_p6 = scmp.lt.s32.totalorder %s522_s28, %s522_s28 }
  0x4e   :  { %v94_v22 = vadd.f32 %v90_v14, %v86_v7  ;;  %v95_v25 = vadd.f32 %v91_v18, %v87_v8  ;;  %v96_v26 = vadd.f32 %v92_v19, %v88_v12  ;;  %v100_v27 = vmul.f32 %v676_v17, %v676_v17 }
  0x4f   :  { %v101_v28 = vadd.f32 %v97_v20, %v93_v21  ;;  %p529_p7 = por %p528_p6, %p527_p5 }
  0x50   :  { %v102_v29 = vadd.f32 %v98_v23, %v94_v22  ;;  %v103_v30 = vadd.f32 %v99_v24, %v95_v25  ;;  %v104_v31 = vadd.f32 %v100_v27, %v96_v26 }
  0x51   :  { %v105_v32 = vadd.f32 1e-12, %v101_v28  ;;  %p530_p8 = pnand %p529_p7, %p523_p4 }
  0x52   :  { %v106_v33 = vadd.f32 1e-12, %v102_v29  ;;  %v107_v34 = vadd.f32 1e-12, %v103_v30  ;;  %v108_v35 = vadd.f32 1e-12, %v104_v31 }
  0x53   :  { %422 = vrsqrt.f32 %v105_v32 }
  0x54   :  { %424 = vrsqrt.f32 %v106_v33 }
  0x55   :  { %426 = vrsqrt.f32 %v107_v34 }
  0x56   :  { %428 = vrsqrt.f32 %v108_v35 }
  0x5d   :  { %v690_v36 = vpop.eup %422 }
  0x5e   :  { %v692_v37 = vpop.eup %424  ;;  %v695_v38 = vmul.f32 %v690_v36, %v73_v0  ;;  %v709_v43 = vmul.f32 %v690_v36, %v658_v4 }
  0x5f   :  { %v697_v39 = vpop.eup %426  ;;  %v700_v40 = vmul.f32 %v692_v37, %v74_v1  ;;  %v713_v44 = vmul.f32 %v692_v37, %v660_v5 }
  0x60   :  { %v702_v41 = vpop.eup %428  ;;  %v705_v42 = vmul.f32 %v697_v39, %v75_v2  ;;  %v125_v45 = vmul.f32 %v695_v38, %v73_v0  ;;  %v721_v47 = vmul.f32 %v697_v39, %v662_v9  ;;  %v143_v51 = vmul.f32 %v695_v38, %v658_v4 }
  0x61   :  { %v717_v46 = vmul.f32 %v702_v41, %v76_v3  ;;  %v725_v48 = vmul.f32 %v702_v41, %v664_v10  ;;  %v126_v49 = vmul.f32 %v700_v40, %v74_v1  ;;  %v144_v52 = vmul.f32 %v700_v40, %v660_v5 }
  0x62   :  { %v127_v50 = vmul.f32 %v705_v42, %v75_v2  ;;  %v145_v53 = vmul.f32 %v705_v42, %v662_v9  ;;  %v161_v56 = vmul.f32 %v695_v38, %v666_v11  ;;  %v162_v57 = vmul.f32 %v700_v40, %v672_v15 }
  0x63   :  { %v128_v54 = vmul.f32 %v717_v46, %v76_v3  ;;  %v146_v55 = vmul.f32 %v717_v46, %v664_v10  ;;  %v163_v60 = vmul.f32 %v705_v42, %v674_v16  ;;  %v164_v61 = vmul.f32 %v717_v46, %v676_v17 }
  0x64   :  { %v129_v58 = vadd.f32 %v127_v50, %v125_v45  ;;  %v147_v59 = vadd.f32 %v145_v53, %v143_v51  ;;  %v179_v0 = vmul.f32 %v709_v43, %v658_v4  ;;  %v180_v1 = vmul.f32 %v713_v44, %v660_v5 }
  0x65   :  { %v136_v62 = vadd.f32 %v128_v54, %v126_v49  ;;  %v154_v63 = vadd.f32 %v146_v55, %v144_v52  ;;  %v165_v6 = vadd.f32 %v163_v60, %v161_v56  ;;  %v172_v7 = vadd.f32 %v164_v61, %v162_v57 }
  0x66   :  { %v130_v2 = vrot.slane %v129_v58, 4  ;;  %v148_v3 = vrot.slane %v147_v59, 4  ;;  %v181_v13 = vmul.f32 %v721_v47, %v662_v9  ;;  %v182_v14 = vmul.f32 %v725_v48, %v664_v10 }
  0x67   :  { %v137_v8 = vrot.slane %v136_v62, 4  ;;  %v155_v12 = vrot.slane %v154_v63, 4  ;;  %v166_v20 = vrot.slane %v165_v6, 4  ;;  %v173_v21 = vrot.slane %v172_v7, 4 }
  0x68   :  { %v131_v18 = vadd.f32 %v130_v2, %v129_v58  ;;  %v149_v19 = vadd.f32 %v148_v3, %v147_v59  ;;  %v183_v23 = vadd.f32 %v181_v13, %v179_v0  ;;  %v190_v5 = vadd.f32 %v182_v14, %v180_v1 }
  0x69   :  { %v138_v4 = vadd.f32 %v137_v8, %v136_v62  ;;  %v156_v22 = vadd.f32 %v155_v12, %v154_v63  ;;  %v167_v26 = vadd.f32 %v166_v20, %v165_v6  ;;  %v174_v27 = vadd.f32 %v173_v21, %v172_v7 }
  0x6a   :  { %v132_v24 = vrot.slane %v131_v18, 2  ;;  %v150_v25 = vrot.slane %v149_v19, 2  ;;  %v184_v30 = vrot.slane %v183_v23, 4  ;;  %v191_v31 = vrot.slane %v190_v5, 4 }
  0x6b   :  { %v139_v28 = vrot.slane %v138_v4, 2  ;;  %v157_v29 = vrot.slane %v156_v22, 2  ;;  %v168_v9 = vrot.slane %v167_v26, 2  ;;  %v175_v32 = vrot.slane %v174_v27, 2 }
  0x6c   :  { %v133_v33 = vadd.f32 %v132_v24, %v131_v18  ;;  %v151_v10 = vadd.f32 %v150_v25, %v149_v19  ;;  %v185_v34 = vadd.f32 %v184_v30, %v183_v23  ;;  %v192_v35 = vadd.f32 %v191_v31, %v190_v5 }
  0x6d   :  { %v140_v45 = vadd.f32 %v139_v28, %v138_v4  ;;  %v158_v49 = vadd.f32 %v157_v29, %v156_v22  ;;  %v169_v50 = vadd.f32 %v168_v9, %v167_v26  ;;  %v176_v51 = vadd.f32 %v175_v32, %v174_v27  ;;  %v798_v28 = vld [vmem:[#allocation8] sm:$0xff]  ;;  %v800_v29 = vld [vmem:[#allocation8 + $0x8] sm:$0xff] }
  0x6e   :  { %v186_v52 = vrot.slane %v185_v34, 2  ;;  %v193_v53 = vrot.slane %v192_v35, 2  ;;  %v756_v54 = vmul.f32 %v690_v36, %v666_v11  ;;  %v760_v55 = vmul.f32 %v692_v37, %v672_v15 }
  0x6f   :  { %v764_v56 = vmul.f32 %v697_v39, %v674_v16  ;;  %v768_v57 = vmul.f32 %v702_v41, %v676_v17  ;;  %v134_v58 = vrot.slane %v133_v33, 1  ;;  %v152_v59 = vrot.slane %v151_v10, 1 }
  0x70   :  { %v187_v60 = vadd.f32 %v186_v52, %v185_v34  ;;  %v194_v61 = vadd.f32 %v193_v53, %v192_v35  ;;  %v141_v62 = vrot.slane %v140_v45, 1  ;;  %v159_v63 = vrot.slane %v158_v49, 1 }
  0x71   :  { %v197_v36 = vmul.f32 %v709_v43, %v666_v11  ;;  %v198_v37 = vmul.f32 %v713_v44, %v672_v15  ;;  %v170_v0 = vrot.slane %v169_v50, 1  ;;  %v177_v1 = vrot.slane %v176_v51, 1 }
  0x72   :  { %v199_v39 = vmul.f32 %v721_v47, %v674_v16  ;;  %v200_v41 = vmul.f32 %v725_v48, %v676_v17  ;;  %v215_v2 = vmul.f32 %v756_v54, %v666_v11  ;;  %v216_v3 = vmul.f32 %v760_v55, %v672_v15 }
  0x73   :  { %v217_v6 = vmul.f32 %v764_v56, %v674_v16  ;;  %v218_v7 = vmul.f32 %v768_v57, %v676_v17  ;;  %v188_v8 = vrot.slane %v187_v60, 1  ;;  %v195_v12 = vrot.slane %v194_v61, 1 }
  0x74   :  { %v201_v13 = vadd.f32 %v199_v39, %v197_v36  ;;  %v208_v14 = vadd.f32 %v200_v41, %v198_v37  ;;  %v786_v18 = vadd.f32 %v134_v58, %v133_v33  ;;  %v788_v19 = vadd.f32 %v152_v59, %v151_v10  ;;  %v810_v33 = vld [vmem:[#allocation8 + $0x10] sm:$0xff]  ;;  %v812_v10 = vld [vmem:[#allocation8 + $0x18] sm:$0xff] }
  0x75   :  { %v219_v20 = vadd.f32 %v217_v6, %v215_v2  ;;  %v226_v21 = vadd.f32 %v218_v7, %v216_v3  ;;  %v790_v11 = vadd.f32 %v141_v62, %v140_v45  ;;  %v792_v4 = vadd.f32 %v159_v63, %v158_v49 }
  0x76   :  { %v202_v15 = vrot.slane %v201_v13, 4  ;;  %v209_v22 = vrot.slane %v208_v14, 4  ;;  %v794_v16 = vadd.f32 %v170_v0, %v169_v50  ;;  %v796_v23 = vadd.f32 %v177_v1, %v176_v51 }
  0x77   :  { %v220_v17 = vrot.slane %v219_v20, 4  ;;  %v227_v5 = vrot.slane %v226_v21, 4  ;;  %v189_v24 = vadd.f32 %v188_v8, %v187_v60  ;;  %v196_v25 = vadd.f32 %v195_v12, %v194_v61 }
  0x78   :  { %v203_v26 = vadd.f32 %v202_v15, %v201_v13  ;;  %v210_v27 = vadd.f32 %v209_v22, %v208_v14  ;;  %v804_v9 = vmul.f32 %v794_v16, %v794_v16  ;;  %v808_v32 = vmul.f32 %v796_v23, %v796_v23 }
  0x79   :  { %v221_v30 = vadd.f32 %v220_v17, %v219_v20  ;;  %v228_v31 = vadd.f32 %v227_v5, %v226_v21  ;;  %v247_v45 = vmul.f32 %v189_v24, %v794_v16  ;;  %v248_v49 = vmul.f32 %v196_v25, %v796_v23 }
  0x7a   :  { %v204_v34 = vrot.slane %v203_v26, 2  ;;  %v211_v35 = vrot.slane %v210_v27, 2  ;;  %v297_v52 = vmul.f32 %v798_v28, %v695_v38  ;;  %v298_v53 = vmul.f32 %v800_v29, %v700_v40 }
  0x7b   :  { %v222_v50 = vrot.slane %v221_v30, 2  ;;  %v229_v51 = vrot.slane %v228_v31, 2  ;;  %v299_v60 = vmul.f32 %v810_v33, %v705_v42  ;;  %v300_v61 = vmul.f32 %v812_v10, %v717_v46 }
  0x7c   :  { %v205_v58 = vadd.f32 %v204_v34, %v203_v26  ;;  %v212_v59 = vadd.f32 %v211_v35, %v210_v27  ;;  %v826_v36 = vmul.f32 %v794_v16, %v788_v19  ;;  %v830_v38 = vmul.f32 %v796_v23, %v792_v4 }
  0x7d   :  { %v223_v62 = vadd.f32 %v222_v50, %v221_v30  ;;  %v230_v63 = vadd.f32 %v229_v51, %v228_v31  ;;  %v833_v0 = vmul.f32 %v189_v24, %v786_v18  ;;  %v836_v42 = vmul.f32 %v196_v25, %v790_v11 }
  0x7e   :  { %v206_v37 = vrot.slane %v205_v58, 1  ;;  %v213_v40 = vrot.slane %v212_v59, 1  ;;  %v315_v39 = vmul.f32 %v798_v28, %v709_v43  ;;  %v316_v41 = vmul.f32 %v800_v29, %v713_v44 }
  0x7f   :  { %v224_v1 = vrot.slane %v223_v62, 1  ;;  %v231_v46 = vrot.slane %v230_v63, 1  ;;  %v301_v6 = vadd.f32 %v299_v60, %v297_v52  ;;  %v308_v7 = vadd.f32 %v300_v61, %v298_v53 }
  0x80   :  { %v207_v2 = vadd.f32 %v206_v37, %v205_v58  ;;  %v214_v3 = vadd.f32 %v213_v40, %v212_v59  ;;  %v317_v13 = vmul.f32 %v810_v33, %v721_v47  ;;  %v318_v14 = vmul.f32 %v812_v10, %v725_v48 }
  0x81   :  { %v225_v8 = vadd.f32 %v224_v1, %v223_v62  ;;  %v232_v12 = vadd.f32 %v231_v46, %v230_v63  ;;  %v302_v47 = vrot.slane %v301_v6, 4  ;;  %v309_v30 = vrot.slane %v308_v7, 4 }
  0x82   :  { %v235_v20 = vmul.f32 %v207_v2, %v207_v2  ;;  %v236_v21 = vmul.f32 %v214_v3, %v214_v3  ;;  %v239_v15 = vmul.f32 %v207_v2, %v794_v16  ;;  %v240_v43 = vmul.f32 %v214_v3, %v796_v23 }
  0x83   :  { %v233_v22 = vmul.f32 %v225_v8, %v189_v24  ;;  %v234_v44 = vmul.f32 %v232_v12, %v196_v25  ;;  %v241_v17 = vmul.f32 %v225_v8, %v788_v19  ;;  %v242_v5 = vmul.f32 %v232_v12, %v792_v4 }
  0x84   :  { %v245_v26 = vmul.f32 %v207_v2, %v788_v19  ;;  %v246_v27 = vmul.f32 %v214_v3, %v792_v4  ;;  %v319_v50 = vadd.f32 %v317_v13, %v315_v39  ;;  %v326_v51 = vadd.f32 %v318_v14, %v316_v41 }
  0x85   :  { %v852_v31 = vsub.f32 %v233_v22, %v235_v20  ;;  %v854_v48 = vsub.f32 %v234_v44, %v236_v21  ;;  %v856_v34 = vsub.f32 %v239_v15, %v241_v17  ;;  %v858_v35 = vsub.f32 %v240_v43, %v242_v5 }
  0x86   :  { %v860_v24 = vsub.f32 %v245_v26, %v247_v45  ;;  %v862_v25 = vsub.f32 %v246_v27, %v248_v49  ;;  %v865_v52 = vmul.f32 %v225_v8, %v786_v18  ;;  %v868_v53 = vmul.f32 %v232_v12, %v790_v11 }
  0x87   :  { %v269_v58 = vmul.f32 %v852_v31, %v786_v18  ;;  %v270_v59 = vmul.f32 %v854_v48, %v790_v11  ;;  %v271_v45 = vmul.f32 %v856_v34, %v788_v19  ;;  %v272_v49 = vmul.f32 %v858_v35, %v792_v4 }
  0x88   :  { %v275_v60 = vmul.f32 %v860_v24, %v794_v16  ;;  %v276_v61 = vmul.f32 %v862_v25, %v796_v23  ;;  %v259_v62 = vmul.f32 %v207_v2, %v786_v18  ;;  %v260_v63 = vmul.f32 %v214_v3, %v790_v11 }
  0x89   :  { %v303_v37 = vadd.f32 %v302_v47, %v301_v6  ;;  %v310_v40 = vadd.f32 %v309_v30, %v308_v7  ;;  %v273_v1 = vadd.f32 %v271_v45, %v269_v58  ;;  %v274_v46 = vadd.f32 %v272_v49, %v270_v59 }
  0x8a   :  { %v320_v39 = vrot.slane %v319_v50, 4  ;;  %v327_v41 = vrot.slane %v326_v51, 4  ;;  %v333_v13 = vmul.f32 %v798_v28, %v756_v54  ;;  %v334_v16 = vmul.f32 %v800_v29, %v760_v55 }
  0x8b   :  { %v304_v8 = vrot.slane %v303_v37, 2  ;;  %v311_v12 = vrot.slane %v310_v40, 2  ;;  %v277_v14 = vadd.f32 %v275_v60, %v273_v1  ;;  %v278_v23 = vadd.f32 %v276_v61, %v274_v46 }
  0x8c   :  { %v321_v20 = vadd.f32 %v320_v39, %v319_v50  ;;  %v328_v18 = vadd.f32 %v327_v41, %v326_v51  ;;  %v335_v3 = vmul.f32 %v810_v33, %v764_v56  ;;  %v336_v6 = vmul.f32 %v812_v10, %v768_v57 }
  0x8d   :  { %v305_v2 = vadd.f32 %v304_v8, %v303_v37  ;;  %v312_v11 = vadd.f32 %v311_v12, %v310_v40  ;;  %v279_v7 = vand.u32 2147483647, %v277_v14  ;;  %v280_v21 = vand.u32 2147483647, %v278_v23 }
  0x8e   :  { %v322_v15 = vrot.slane %v321_v20, 2  ;;  %v329_v43 = vrot.slane %v328_v18, 2  ;;  %v337_v22 = vadd.f32 %v335_v3, %v333_v13  ;;  %v344_v55 = vadd.f32 %v336_v6, %v334_v16 }
  0x8f   :  { %v306_v54 = vrot.slane %v305_v2, 1  ;;  %v313_v28 = vrot.slane %v312_v11, 1  ;;  %vm281_vm0 = vcmp.lt.f32.partialorder %v279_v7, 1e-30  ;;  %vm282_vm1 = vcmp.lt.f32.partialorder %v280_v21, 1e-30 }
  0x90   :  { %v323_v29 = vadd.f32 %v322_v15, %v321_v20  ;;  %v330_v44 = vadd.f32 %v329_v43, %v328_v18  ;;  %v283_v17 = vsel %vm281_vm0, 1.0, %v277_v14  ;;  %v284_v5 = vsel %vm282_vm1, 1.0, %v278_v23 }
  0x91   :  { %v307_v26 = vadd.f32 %v306_v54, %v305_v2  ;;  %v314_v27 = vadd.f32 %v313_v28, %v312_v11  ;;  %430 = vrcp.f32 %v283_v17  ;;  %v338_v57 = vrot.slane %v337_v22, 4 }
  0x92   :  { %v324_v56 = vrot.slane %v323_v29, 1  ;;  %v331_v33 = vrot.slane %v330_v44, 1  ;;  %v255_v10 = vsub.f32 %v865_v52, %v804_v9  ;;  %v265_v47 = vmul.f32 %v788_v19, %v788_v19 }
  0x93   :  { %432 = vrcp.f32 %v284_v5  ;;  %v345_v30 = vrot.slane %v344_v55, 4  ;;  %v261_v50 = vsub.f32 %v826_v36, %v259_v62  ;;  %v339_v59 = vadd.f32 %v338_v57, %v337_v22 }
  0x94   :  { %v325_v51 = vadd.f32 %v324_v56, %v323_v29  ;;  %v332_v58 = vadd.f32 %v331_v33, %v330_v44  ;;  %v256_v45 = vsub.f32 %v868_v53, %v808_v32  ;;  %v262_v49 = vsub.f32 %v830_v38, %v260_v63 }
  0x95   :  { %v266_v60 = vmul.f32 %v792_v4, %v792_v4  ;;  %v346_v61 = vadd.f32 %v345_v30, %v344_v55  ;;  %v340_v9 = vrot.slane %v339_v59, 2  ;;  %v351_v52 = vmul.f32 %v307_v26, %v852_v31 }
  0x96   :  { %v352_v19 = vmul.f32 %v314_v27, %v854_v48  ;;  %v363_v37 = vmul.f32 %v307_v26, %v856_v34  ;;  %v353_v62 = vmul.f32 %v325_v51, %v856_v34  ;;  %v364_v40 = vmul.f32 %v314_v27, %v858_v35 }
  0x97   :  { %v347_v36 = vrot.slane %v346_v61, 2  ;;  %v375_v32 = vmul.f32 %v307_v26, %v860_v24  ;;  %v341_v53 = vadd.f32 %v340_v9, %v339_v59  ;;  %v354_v38 = vmul.f32 %v332_v58, %v858_v35 }
  0x98   :  { %v365_v63 = vmul.f32 %v325_v51, %v255_v10  ;;  %v377_v4 = vmul.f32 %v325_v51, %v261_v50  ;;  %v366_v46 = vmul.f32 %v332_v58, %v256_v45  ;;  %v376_v31 = vmul.f32 %v314_v27, %v862_v25 }
  0x99   :  { %v348_v1 = vadd.f32 %v347_v36, %v346_v61  ;;  %v378_v39 = vmul.f32 %v332_v58, %v262_v49  ;;  %v267_v48 = vsub.f32 %v833_v0, %v265_v47  ;;  %v342_v41 = vrot.slane %v341_v53, 1 }
  0x9a   :  { %v268_v8 = vsub.f32 %v836_v42, %v266_v60  ;;  %v355_v12 = vadd.f32 %v353_v62, %v351_v52  ;;  %v356_v14 = vadd.f32 %v354_v38, %v352_v19  ;;  %v367_v23 = vadd.f32 %v365_v63, %v363_v37 }
  0x9b   :  { %v349_v34 = vrot.slane %v348_v1, 1  ;;  %v431_v13 = vpop.eup %430  ;;  %v343_v16 = vadd.f32 %v342_v41, %v341_v53  ;;  %v379_v20 = vadd.f32 %v377_v4, %v375_v32  ;;  %v368_v11 = vadd.f32 %v366_v46, %v364_v40 }
  0x9c   :  { %v287_v18 = vmul.f32 %v431_v13, %v283_v17  ;;  %v380_v3 = vadd.f32 %v378_v39, %v376_v31 }
  0x9d   :  { %v433_v35 = vpop.eup %432  ;;  %v350_v2 = vadd.f32 %v349_v34, %v348_v1  ;;  %v357_v7 = vmul.f32 %v343_v16, %v860_v24  ;;  %v369_v21 = vmul.f32 %v343_v16, %v261_v50  ;;  %v381_v0 = vmul.f32 %v343_v16, %v267_v48 }
  0x9e   :  { %v288_v6 = vmul.f32 %v433_v35, %v284_v5  ;;  %v289_v15 = vsub.f32 2.0, %v287_v18 }
  0x9f   :  { %v358_v42 = vmul.f32 %v350_v2, %v862_v25  ;;  %v370_v43 = vmul.f32 %v350_v2, %v262_v49  ;;  %v382_v54 = vmul.f32 %v350_v2, %v268_v8  ;;  %v359_v22 = vadd.f32 %v357_v7, %v355_v12 }
  0xa0   :  { %v290_v28 = vsub.f32 2.0, %v288_v6  ;;  %v371_v55 = vadd.f32 %v369_v21, %v367_v23  ;;  %v383_v29 = vadd.f32 %v381_v0, %v379_v20  ;;  %v291_v44 = vmul.f32 %v431_v13, %v289_v15 }
  0xa1   :  { %v360_v26 = vadd.f32 %v358_v42, %v356_v14  ;;  %v372_v17 = vadd.f32 %v370_v43, %v368_v11  ;;  %v384_v27 = vadd.f32 %v382_v54, %v380_v3 }
  0xa2   :  { %v292_v56 = vmul.f32 %v433_v35, %v290_v28  ;;  %v361_v5 = vmul.f32 %v359_v22, %v291_v44  ;;  %v373_v33 = vmul.f32 %v371_v55, %v291_v44  ;;  %v385_v24 = vmul.f32 %v383_v29, %v291_v44 }
  0xa4   :  { %v362_v57 = vmul.f32 %v360_v26, %v292_v56  ;;  %v374_v10 = vmul.f32 %v372_v17, %v292_v56  ;;  %v386_v47 = vmul.f32 %v384_v27, %v292_v56  ;;  %v388_v25 = vsel %vm387_vm2, %v361_v5, %v373_v33 }
  0xa5   :  { %v391_v50 = vsel %vm390_vm3, %v388_v25, %v385_v24 }
  0xa6   :  { %v389_v30 = vsel %vm387_vm2, %v362_v57, %v374_v10 }
  0xa7   :  { %v392_v51 = vsel %vm390_vm3, %v389_v30, %v386_v47 }
  0xa8   :  { %v395_v58 = vcombine.low %v391_v50, %v392_v51 }
  0xaa   :  { %397 = vst [vmem:[#allocation10] sm:$0x77] %v395_v58 }
  0xab   :  { %533 = shalt.err (!%p530_p8)
}
  0xac   :  { %s534_s13 = scalar_lea.hbm %s930_s4, 128 }
  0xad   :  { %p535_p9 = scmp.ne.s32.totalorder %s930_s4, %s534_s13  ;;  %p538_p10 = scmp.lt.u32.totalorder %s534_s13, %s930_s4 }
  0xaf   :  { %p540_p11 = pnand %p538_p10, %p535_p9 }
  0xb1   :  { %543 = shalt.err (!%p540_p11)
}
  0xb2   :  { %407 = dma.vmem_to_hbm [thread:$0]  %s405_s27, 128, %s930_s4, [#allocation4]  }
  0xb3   :  { %550 = dma.done.wait [#allocation4], 128  }
  0xb4   :  { %551 = vsyncadd [#allocation4], 4294967168 }
  0xb5   :  { %411 = vsyncpa [#allocation3], 1 }
  0xb6   :  { %412 = vsyncpa [#allocation6], 1 }
  0xb7   :  { %413 = vsyncpa [#allocation9], 1 }
  0xb8   :  { %414 = vsyncpa [#allocation4], 1 }

</bundles_post_ra>
